<compile_context>
chip_gen: v6e
topology: v6e:2x2x1
jax: 0.10.0
libtpu: 0.0.40
codegen_flags: <defaults>
</compile_context>

<pallas_src>
import functools
import numpy as np
import jax
import jax.numpy as jnp
from jax.experimental import pallas as pl
from jax.experimental.pallas import tpu as pltpu

SB = 8     # boards (sublanes) per block
L = 128    # lane width

# Row offsets inside the stacked weight tile (K padded to multiples of 16 for bf16).
CONV0, CONV1 = 0, 16      # conv-as-matrix : K=9  -> 16, N=64
FC0, FC1     = 16, 80     # fc             : K=64      , N=32
A10, A11     = 80, 112    # fc_action1     : K=32      , N=16
A20, A21     = 112, 128   # fc_action2     : K=16      , N=9
V10, V11     = 128, 160   # fc_value1      : K=32      , N=8
V20, V21     = 160, 176   # fc_value2      : K=8  -> 16, N=1
KROWS = 176


def _policy_kernel(x_ref, w_ref, b_ref, out_ref):
    x = x_ref[...]                     # (8,128) f32, board b in row b, lanes 0..8
    b = b_ref[...]                     # (8,128) f32, one bias per row
    cols = jax.lax.broadcasted_iota(jnp.int32, (SB, L), 1)
    valid = cols < 9

    def dot(lhs, r0, r1):
        # bf16 MXU matmul with f32 accumulation; weights are pre-cast to bf16.
        return jnp.dot(lhs.astype(jnp.bfloat16), w_ref[r0:r1, :],
                       preferred_element_type=jnp.float32)

    # conv (as dense 9->64 matmul) + relu
    f = jnp.maximum(dot(x[:, :16], CONV0, CONV1), 0.0)
    # shared fc + relu
    h = jnp.maximum(dot(f[:, :64], FC0, FC1) + b[0:1, :], 0.0)

    # --- action head ---
    ha = jnp.maximum(dot(h[:, :32], A10, A11) + b[1:2, :], 0.0)
    a = dot(ha[:, :16], A20, A21) + b[2:3, :]

    # availability mask from raw board (|x| != 1), masked softmax per board (row)
    avail = jnp.where(valid, (jnp.abs(x) != 1.0).astype(jnp.float32), 0.0)
    maxa = jnp.max(jnp.where(valid, a, -jnp.inf), axis=-1, keepdims=True)
    e = avail * jnp.exp(jnp.where(valid, a, maxa) - maxa)
    prob = e * pl.reciprocal(jnp.sum(e, axis=-1, keepdims=True), approx=True)

    # --- value head ---
    hv = jnp.maximum(dot(h[:, :32], V10, V11) + b[3:4, :], 0.0)
    v = jnp.tanh(dot(hv[:, :16], V20, V21) + b[4:5, :])

    # single output tile: prob in lanes 0..8, value in lane 9
    out_ref[...] = jnp.where(cols == 9, v[:, 0:1], prob)


def _conv_as_matrix(w_conv):
    # w_conv: (16,1,2,2) torch-style Conv2d weight.
    # Build M (9,64) mapping flattened 3x3 board -> flattened conv output with
    # torch's flatten order: feature index = c*4 + i*2 + j.
    w = np.asarray(w_conv, np.float32)
    M = np.zeros((9, 64), np.float32)
    for c in range(16):
        for i in range(2):
            for j in range(2):
                col = c * 4 + i * 2 + j
                for di in range(2):
                    for dj in range(2):
                        M[(i + di) * 3 + (j + dj), col] = w[c, 0, di, dj]
    return M


def prepare_params(params):
    """One-time host-side parameter preparation (padding, stacking, bf16 cast)."""
    def padw(w, k):  # w: (k_real, n_real) in (in, out) orientation
        out = np.zeros((k, L), np.float32)
        out[:w.shape[0], :w.shape[1]] = np.asarray(w, np.float32)
        return out

    w_stack = np.concatenate([
        padw(_conv_as_matrix(params["conv_w"]), 16),
        padw(np.asarray(params["fc_w"]).T, 64),
        padw(np.asarray(params["a1_w"]).T, 32),
        padw(np.asarray(params["a2_w"]).T, 16),
        padw(np.asarray(params["v1_w"]).T, 32),
        padw(np.asarray(params["v2_w"]).T, 16),
    ], axis=0)
    assert w_stack.shape == (KROWS, L)

    biases = np.zeros((SB, L), np.float32)
    for r, name in enumerate(["fc_b", "a1_b", "a2_b", "v1_b", "v2_b"]):
        bv = np.asarray(params[name], np.float32)
        biases[r, :bv.shape[0]] = bv

    return {"w": jnp.asarray(w_stack, jnp.bfloat16),
            "b": jnp.asarray(biases, jnp.float32)}


@jax.jit
def _policy_apply(x, w, b):
    batch = x.shape[0]
    bp = ((batch + SB - 1) // SB) * SB           # pad batch to a multiple of 8
    xb = x.reshape(batch, 9).astype(jnp.float32)
    xpad = jnp.zeros((bp, L), jnp.float32).at[:batch, :9].set(xb)

    out = pl.pallas_call(
        _policy_kernel,
        out_shape=jax.ShapeDtypeStruct((bp, L), jnp.float32),
        grid_spec=pltpu.PrefetchScalarGridSpec(
            num_scalar_prefetch=0,
            grid=(bp // SB,),
            in_specs=[pl.BlockSpec((SB, L), lambda i: (i, 0)),       # boards
                      pl.BlockSpec((KROWS, L), lambda i: (0, 0)),    # stacked weights (resident)
                      pl.BlockSpec((SB, L), lambda i: (0, 0))],      # biases (resident)
            out_specs=pl.BlockSpec((SB, L), lambda i: (i, 0)),
        ),
        compiler_params=pltpu.CompilerParams(
            dimension_semantics=("parallel",)),    # batch blocks split across TCs on v7x
    )(xpad, w, b)

    return out[:batch, :9], out[:batch, 9:10]


def policy_forward(x, prepared):
    # x: (B,1,3,3) float32 boards with values in {-1,0,1}; B==1 matches torch exactly.
    batch = x.shape[0]
    probs, values = _policy_apply(x, prepared["w"], prepared["b"])
    if batch == 1:
        return probs.reshape(3, 3), values.reshape(1, 1)
    return probs.reshape(batch, 3, 3), values


def init_params(key):
    # Deterministic, PyTorch-default-style uniform(-1/sqrt(fan_in), 1/sqrt(fan_in)) init.
    ks = jax.random.split(key, 11)

    def u(k, shape, fan_in):
        bound = 1.0 / np.sqrt(fan_in)
        return jax.random.uniform(k, shape, jnp.float32, -bound, bound)

    p = {}
    p["conv_w"] = u(ks[0], (16, 1, 2, 2), 4)           # Conv2d(1,16,k=2,bias=False)
    p["fc_w"], p["fc_b"] = u(ks[1], (32, 64), 64), u(ks[2], (32,), 64)
    p["a1_w"], p["a1_b"] = u(ks[3], (16, 32), 32), u(ks[4], (16,), 32)
    p["a2_w"], p["a2_b"] = u(ks[5], (9, 16), 16), u(ks[6], (9,), 16)
    p["v1_w"], p["v1_b"] = u(ks[7], (8, 32), 32), u(ks[8], (8,), 32)
    p["v2_w"], p["v2_b"] = u(ks[9], (1, 8), 8), u(ks[10], (1,), 8)
    return p


def policy_forward_ref(x, params):
    # Pure-JAX reference mirroring the torch forward exactly (single board).
    xb = x[0, 0]
    w = params["conv_w"]
    y = jnp.zeros((16, 2, 2), jnp.float32)
    for i in range(2):
        for j in range(2):
            patch = xb[i:i + 2, j:j + 2]
            y = y.at[:, i, j].set(jnp.sum(w[:, 0] * patch[None], axis=(1, 2)))
    f = jnp.maximum(y.reshape(1, 64), 0.0)
    h = jnp.maximum(f @ params["fc_w"].T + params["fc_b"], 0.0)
    ha = jnp.maximum(h @ params["a1_w"].T + params["a1_b"], 0.0)
    a = ha @ params["a2_w"].T + params["a2_b"]
    avail = (jnp.abs(xb) != 1.0).astype(jnp.float32).reshape(1, 9)
    maxa = jnp.max(a)
    e = avail * jnp.exp(a - maxa)
    prob = (e / jnp.sum(e)).reshape(3, 3)
    hv = jnp.maximum(h @ params["v1_w"].T + params["v1_b"], 0.0)
    value = jnp.tanh(hv @ params["v2_w"].T + params["v2_b"])
    return prob, value


if __name__ == "__main__":
    key = jax.random.PRNGKey(0)
    pkey, xkey, bkey = jax.random.split(key, 3)
    params = init_params(pkey)
    prepared = prepare_params(params)   # one-time weight prep (padding + bf16 cast)

    # --- single-board path (identical semantics to the torch module) ---
    board = jax.random.randint(xkey, (3, 3), -1, 2).astype(jnp.float32)
    x = board.reshape(1, 1, 3, 3)
    prob, value = policy_forward(x, prepared)
    jax.block_until_ready((prob, value))
    prob_ref, value_ref = policy_forward_ref(x, params)
    ok = (prob.shape == (3, 3) and value.shape == (1, 1)
          and bool(jnp.allclose(prob, prob_ref, rtol=5e-2, atol=1e-2))
          and bool(jnp.allclose(value, value_ref, rtol=5e-2, atol=1e-2)))

    # --- batched path: several boards through one kernel call ---
    B = 5
    boards = jax.random.randint(bkey, (B, 3, 3), -1, 2).astype(jnp.float32)
    boards = boards.at[:, 1, 1].set(0.0)   # guarantee at least one legal move per board
    xb = boards.reshape(B, 1, 3, 3)
    probs_b, values_b = policy_forward(xb, prepared)
    jax.block_until_ready((probs_b, values_b))
    for i in range(B):
        pr, vr = policy_forward_ref(xb[i:i + 1], params)
        ok = ok and bool(jnp.allclose(probs_b[i], pr, rtol=5e-2, atol=1e-2))
        ok = ok and bool(jnp.allclose(values_b[i], vr[0, 0], rtol=5e-2, atol=1e-2))

    # TODO(synk): a completely full board yields sum(exp)==0 -> NaN probs, exactly like
    # the torch reference; guard upstream if that state is reachable.

    if ok:
        print("KERNEL_OK")
    else:
        print("MISMATCH")
        print("prob (pallas):", prob)
        print("prob (ref):   ", prob_ref)
        print("value (pallas):", value, " value (ref):", value_ref)
</pallas_src>

<mosaic_0001>
module attributes {stable_mosaic.version = 11 : i64} {
  func.func @_policy_kernel(%arg0: i32, %arg1: memref<8x128xf32, #tpu.memory_space<vmem>>, %arg2: memref<176x128xbf16, #tpu.memory_space<vmem>>, %arg3: memref<8x128xf32, #tpu.memory_space<vmem>>, %arg4: memref<8x128xf32, #tpu.memory_space<vmem>>) attributes {dimension_semantics = [#tpu.dimension_semantics<parallel>], iteration_bounds = array<i64: 1>, scalar_prefetch = 0 : i64, scratch_operands = 0 : i64, tpu.core_type = #tpu.core_type<tc>, window_params = [{transform_indices = @transform_0, window_bounds = array<i64: 8, 128>}, {pipeline_mode = #tpu.pipeline_mode<synchronous>, transform_indices = @transform_1, window_bounds = array<i64: 176, 128>}, {pipeline_mode = #tpu.pipeline_mode<synchronous>, transform_indices = @transform_2, window_bounds = array<i64: 8, 128>}, {transform_indices = @transform_3, window_bounds = array<i64: 8, 128>}]} {
    %c0 = arith.constant 0 : index
    %c0_0 = arith.constant 0 : index
    %0 = vector.load %arg1[%c0, %c0_0] : memref<8x128xf32, #tpu.memory_space<vmem>>, vector<8x128xf32>
    %c0_1 = arith.constant 0 : index
    %c0_2 = arith.constant 0 : index
    %1 = vector.load %arg3[%c0_1, %c0_2] : memref<8x128xf32, #tpu.memory_space<vmem>>, vector<8x128xf32>
    %2 = tpu.iota {dimensions = array<i32: 1>} : vector<8x128xi32>
    %c9_i32 = arith.constant 9 : i32
    %3 = vector.broadcast %c9_i32 : i32 to vector<8x128xi32>
    %4 = arith.cmpi slt, %2, %3 : vector<8x128xi32>
    %5 = vector.extract_strided_slice %0 {offsets = [0, 0], sizes = [8, 16], strides = [1, 1]} : vector<8x128xf32> to vector<8x16xf32>
    %6 = arith.truncf %5 : vector<8x16xf32> to vector<8x16xbf16>
    %c0_3 = arith.constant 0 : index
    %c0_4 = arith.constant 0 : index
    %7 = vector.load %arg2[%c0_3, %c0_4] : memref<176x128xbf16, #tpu.memory_space<vmem>>, vector<16x128xbf16>
    %cst = arith.constant dense<0.000000e+00> : vector<8x128xf32>
    %8 = tpu.matmul %6, %7, %cst {dimension_numbers = #tpu.dot_dimension_numbers<[1], [0], [0], [1], [0, 0, 1, 1], [], []>} : vector<8x16xbf16>, vector<16x128xbf16>, vector<8x128xf32> -> vector<8x128xf32>
    %cst_5 = arith.constant 0.000000e+00 : f32
    %9 = vector.broadcast %cst_5 : f32 to vector<8x128xf32>
    %10 = arith.maximumf %8, %9 : vector<8x128xf32>
    %11 = vector.extract_strided_slice %10 {offsets = [0, 0], sizes = [8, 64], strides = [1, 1]} : vector<8x128xf32> to vector<8x64xf32>
    %12 = arith.truncf %11 : vector<8x64xf32> to vector<8x64xbf16>
    %c16 = arith.constant 16 : index
    %c0_6 = arith.constant 0 : index
    %13 = vector.load %arg2[%c16, %c0_6] : memref<176x128xbf16, #tpu.memory_space<vmem>>, vector<64x128xbf16>
    %cst_7 = arith.constant dense<0.000000e+00> : vector<8x128xf32>
    %14 = tpu.matmul %12, %13, %cst_7 {dimension_numbers = #tpu.dot_dimension_numbers<[1], [0], [0], [1], [0, 0, 1, 1], [], []>} : vector<8x64xbf16>, vector<64x128xbf16>, vector<8x128xf32> -> vector<8x128xf32>
    %15 = vector.extract_strided_slice %1 {offsets = [0, 0], sizes = [1, 128], strides = [1, 1]} : vector<8x128xf32> to vector<1x128xf32>
    %16 = vector.broadcast %15 : vector<1x128xf32> to vector<8x128xf32>
    %17 = arith.addf %14, %16 : vector<8x128xf32>
    %cst_8 = arith.constant 0.000000e+00 : f32
    %18 = vector.broadcast %cst_8 : f32 to vector<8x128xf32>
    %19 = arith.maximumf %17, %18 : vector<8x128xf32>
    %20 = vector.extract_strided_slice %19 {offsets = [0, 0], sizes = [8, 32], strides = [1, 1]} : vector<8x128xf32> to vector<8x32xf32>
    %21 = arith.truncf %20 : vector<8x32xf32> to vector<8x32xbf16>
    %c80 = arith.constant 80 : index
    %c0_9 = arith.constant 0 : index
    %22 = vector.load %arg2[%c80, %c0_9] : memref<176x128xbf16, #tpu.memory_space<vmem>>, vector<32x128xbf16>
    %cst_10 = arith.constant dense<0.000000e+00> : vector<8x128xf32>
    %23 = tpu.matmul %21, %22, %cst_10 {dimension_numbers = #tpu.dot_dimension_numbers<[1], [0], [0], [1], [0, 0, 1, 1], [], []>} : vector<8x32xbf16>, vector<32x128xbf16>, vector<8x128xf32> -> vector<8x128xf32>
    %24 = vector.extract_strided_slice %1 {offsets = [1, 0], sizes = [1, 128], strides = [1, 1]} : vector<8x128xf32> to vector<1x128xf32>
    %25 = vector.broadcast %24 : vector<1x128xf32> to vector<8x128xf32>
    %26 = arith.addf %23, %25 : vector<8x128xf32>
    %cst_11 = arith.constant 0.000000e+00 : f32
    %27 = vector.broadcast %cst_11 : f32 to vector<8x128xf32>
    %28 = arith.maximumf %26, %27 : vector<8x128xf32>
    %29 = vector.extract_strided_slice %28 {offsets = [0, 0], sizes = [8, 16], strides = [1, 1]} : vector<8x128xf32> to vector<8x16xf32>
    %30 = arith.truncf %29 : vector<8x16xf32> to vector<8x16xbf16>
    %c112 = arith.constant 112 : index
    %c0_12 = arith.constant 0 : index
    %31 = vector.load %arg2[%c112, %c0_12] : memref<176x128xbf16, #tpu.memory_space<vmem>>, vector<16x128xbf16>
    %cst_13 = arith.constant dense<0.000000e+00> : vector<8x128xf32>
    %32 = tpu.matmul %30, %31, %cst_13 {dimension_numbers = #tpu.dot_dimension_numbers<[1], [0], [0], [1], [0, 0, 1, 1], [], []>} : vector<8x16xbf16>, vector<16x128xbf16>, vector<8x128xf32> -> vector<8x128xf32>
    %33 = vector.extract_strided_slice %1 {offsets = [2, 0], sizes = [1, 128], strides = [1, 1]} : vector<8x128xf32> to vector<1x128xf32>
    %34 = vector.broadcast %33 : vector<1x128xf32> to vector<8x128xf32>
    %35 = arith.addf %32, %34 : vector<8x128xf32>
    %36 = math.absf %0 : vector<8x128xf32>
    %cst_14 = arith.constant 1.000000e+00 : f32
    %37 = vector.broadcast %cst_14 : f32 to vector<8x128xf32>
    %38 = arith.cmpf one, %36, %37 : vector<8x128xf32>
    %39 = arith.extui %38 : vector<8x128xi1> to vector<8x128xi32>
    %40 = arith.sitofp %39 : vector<8x128xi32> to vector<8x128xf32>
    %cst_15 = arith.constant 0.000000e+00 : f32
    %41 = vector.broadcast %cst_15 : f32 to vector<8x128xf32>
    %42 = arith.select %4, %40, %41 : vector<8x128xi1>, vector<8x128xf32>
    %cst_16 = arith.constant 0xFF800000 : f32
    %43 = vector.broadcast %cst_16 : f32 to vector<8x128xf32>
    %44 = arith.select %4, %35, %43 : vector<8x128xi1>, vector<8x128xf32>
    %cst_17 = arith.constant dense<0xFF800000> : vector<8xf32>
    %45 = vector.multi_reduction <maximumf>, %44, %cst_17 [1] : vector<8x128xf32> to vector<8xf32>
    %46 = vector.shape_cast %45 : vector<8xf32> to vector<8x1xf32>
    %47 = vector.shape_cast %46 : vector<8x1xf32> to vector<8x1xf32>
    %48 = vector.broadcast %47 : vector<8x1xf32> to vector<8x128xf32>
    %49 = arith.select %4, %35, %48 : vector<8x128xi1>, vector<8x128xf32>
    %50 = vector.broadcast %46 : vector<8x1xf32> to vector<8x128xf32>
    %51 = arith.subf %49, %50 : vector<8x128xf32>
    %52 = math.exp %51 : vector<8x128xf32>
    %53 = arith.mulf %42, %52 : vector<8x128xf32>
    %cst_18 = arith.constant dense<0.000000e+00> : vector<8xf32>
    %54 = vector.multi_reduction <add>, %53, %cst_18 [1] : vector<8x128xf32> to vector<8xf32>
    %55 = vector.shape_cast %54 : vector<8xf32> to vector<8x1xf32>
    %56 = tpu.reciprocal %55 {approx = true} : vector<8x1xf32> -> vector<8x1xf32>
    %57 = vector.broadcast %56 : vector<8x1xf32> to vector<8x128xf32>
    %58 = arith.mulf %53, %57 : vector<8x128xf32>
    %59 = vector.extract_strided_slice %19 {offsets = [0, 0], sizes = [8, 32], strides = [1, 1]} : vector<8x128xf32> to vector<8x32xf32>
    %60 = arith.truncf %59 : vector<8x32xf32> to vector<8x32xbf16>
    %c128 = arith.constant 128 : index
    %c0_19 = arith.constant 0 : index
    %61 = vector.load %arg2[%c128, %c0_19] : memref<176x128xbf16, #tpu.memory_space<vmem>>, vector<32x128xbf16>
    %cst_20 = arith.constant dense<0.000000e+00> : vector<8x128xf32>
    %62 = tpu.matmul %60, %61, %cst_20 {dimension_numbers = #tpu.dot_dimension_numbers<[1], [0], [0], [1], [0, 0, 1, 1], [], []>} : vector<8x32xbf16>, vector<32x128xbf16>, vector<8x128xf32> -> vector<8x128xf32>
    %63 = vector.extract_strided_slice %1 {offsets = [3, 0], sizes = [1, 128], strides = [1, 1]} : vector<8x128xf32> to vector<1x128xf32>
    %64 = vector.broadcast %63 : vector<1x128xf32> to vector<8x128xf32>
    %65 = arith.addf %62, %64 : vector<8x128xf32>
    %cst_21 = arith.constant 0.000000e+00 : f32
    %66 = vector.broadcast %cst_21 : f32 to vector<8x128xf32>
    %67 = arith.maximumf %65, %66 : vector<8x128xf32>
    %68 = vector.extract_strided_slice %67 {offsets = [0, 0], sizes = [8, 16], strides = [1, 1]} : vector<8x128xf32> to vector<8x16xf32>
    %69 = arith.truncf %68 : vector<8x16xf32> to vector<8x16xbf16>
    %c160 = arith.constant 160 : index
    %c0_22 = arith.constant 0 : index
    %70 = vector.load %arg2[%c160, %c0_22] : memref<176x128xbf16, #tpu.memory_space<vmem>>, vector<16x128xbf16>
    %cst_23 = arith.constant dense<0.000000e+00> : vector<8x128xf32>
    %71 = tpu.matmul %69, %70, %cst_23 {dimension_numbers = #tpu.dot_dimension_numbers<[1], [0], [0], [1], [0, 0, 1, 1], [], []>} : vector<8x16xbf16>, vector<16x128xbf16>, vector<8x128xf32> -> vector<8x128xf32>
    %72 = vector.extract_strided_slice %1 {offsets = [4, 0], sizes = [1, 128], strides = [1, 1]} : vector<8x128xf32> to vector<1x128xf32>
    %73 = vector.broadcast %72 : vector<1x128xf32> to vector<8x128xf32>
    %74 = arith.addf %71, %73 : vector<8x128xf32>
    %75 = math.tanh %74 : vector<8x128xf32>
    %c9_i32_24 = arith.constant 9 : i32
    %76 = vector.broadcast %c9_i32_24 : i32 to vector<8x128xi32>
    %77 = arith.cmpi eq, %2, %76 : vector<8x128xi32>
    %78 = vector.extract_strided_slice %75 {offsets = [0, 0], sizes = [8, 1], strides = [1, 1]} : vector<8x128xf32> to vector<8x1xf32>
    %79 = vector.shape_cast %78 : vector<8x1xf32> to vector<8x1xf32>
    %80 = vector.broadcast %79 : vector<8x1xf32> to vector<8x128xf32>
    %81 = arith.select %77, %80, %58 : vector<8x128xi1>, vector<8x128xf32>
    %c0_25 = arith.constant 0 : index
    %c0_26 = arith.constant 0 : index
    %82 = vector.load %arg4[%c0_25, %c0_26] : memref<8x128xf32, #tpu.memory_space<vmem>>, vector<8x128xf32>
    tpu.vector_store %arg4[%c0_25, %c0_26], %81 {strides = array<i32>} : memref<8x128xf32, #tpu.memory_space<vmem>>, vector<8x128xf32>,
    return
  }
  func.func @transform_0(%arg0: i32) -> (i32, i32) {
    %c0_i32 = arith.constant 0 : i32
    %c0_i32_0 = arith.constant 0 : i32
    return %arg0, %c0_i32 : i32, i32
  }
  func.func @transform_1(%arg0: i32) -> (i32, i32) {
    %c0_i32 = arith.constant 0 : i32
    %c0_i32_0 = arith.constant 0 : i32
    %c0_i32_1 = arith.constant 0 : i32
    return %c0_i32, %c0_i32_0 : i32, i32
  }
  func.func @transform_2(%arg0: i32) -> (i32, i32) {
    %c0_i32 = arith.constant 0 : i32
    %c0_i32_0 = arith.constant 0 : i32
    %c0_i32_1 = arith.constant 0 : i32
    return %c0_i32, %c0_i32_0 : i32, i32
  }
  func.func @transform_3(%arg0: i32) -> (i32, i32) {
    %c0_i32 = arith.constant 0 : i32
    %c0_i32_0 = arith.constant 0 : i32
    return %arg0, %c0_i32 : i32, i32
  }
}

</mosaic_0001>

<bundles_post_ra>
// kernel: _policy_apply.1
= control target key start
LH: loop header
LB: loop body
LE: loop exit
PB: predicated region body
PF: predicated region fallthrough
CT: control target
= control target key end

     0   :  { %8 = vsyncpa [#allocation3], 0  ;;  %s568_s12 = smov [#allocation2]   ;;  %s641_s0 = inlined_call_operand.vmem [shape: f32[8,128], index: 0, kind: input, shape index: {}]   ;;  %s642_s1 = inlined_call_operand.hbm [shape: bf16[176,128], index: 1, kind: input, shape index: {}]   ;;  %s643_s2 = inlined_call_operand.vmem [shape: f32[8,128], index: 2, kind: input, shape index: {}]   ;;  %s644_s3 = inlined_call_operand.vmem [shape: f32[8,128], index: 3, kind: output, shape index: {}]  }
   0x1   :  { %s16_s13 = sshll.u32 %s568_s12, 4  ;;  %s17_s13 = int_to_ptr.vmem [resolvable:$true] %s16_s13 }
   0x2   :  { %s554_s14 = scalar_lea.vmem %s17_s13, 1408  ;;  %p559_p1 = scmp.lt.s32.totalorder %s17_s13, %s17_s13 }
   0x3   :  { %p555_p0 = scmp.ne.s32.totalorder %s17_s13, %s554_s14  ;;  %p560_p2 = scmp.lt.s32.totalorder %s554_s14, %s554_s14 }
   0x5   :  { %p561_p3 = por %p560_p2, %p559_p1 }
   0x7   :  { %p562_p4 = pnand %p561_p3, %p555_p0 }
   0x9   :  { %565 = shalt.err (!%p562_p4)
}
   0xa   :  { %s569_s15 = smov 64   ;;  %s570_s16 = smov 4  }
   0xb   :  { %22 = dma.hbm_to_vmem [thread:$0]  %s642_s1, 1408, %s17_s13, [#allocation3], %s569_s15, %s569_s15, %s570_s16  }
   0xc   :  { %566 = dma.done.wait [#allocation3], 1408  }
   0xd   :  { %567 = vsyncadd [#allocation3], 4294965888  ;;  %v571_v0 = vmov 0.0   ;;  %vm572_vm0 = vmmov 0   ;;  %v529_v1 = vld [vmem:[#allocation2] sm:$0xff]   ;;  %vm43_vm1 = vcmask 130048   ;;  %v31_v18 = vlaneseq }
   0xe   :  { %475 = vmatprep.subr.bf16.mxu0 %v571_v0  ;;  %477 = vmatprep.mubr.msk.bf16.mxu0 %vm572_vm0, %v571_v0  ;;  %v606_v2 = vld [vmem:[%s641_s0] sm:$0xff]  ;;  %v531_v5 = vld [vmem:[#allocation2 + $0x18] sm:$0xff]   ;;  %v532_v6 = vld [vmem:[#allocation2 + $0x10] sm:$0xff]   ;;  %vm125_vm2 = vcmask 523264   ;;  %vm191_vm3 = vcmask 261120   ;;  %v573_v50 = vmov 0  }
   0xf   :  { %481 = vmatprep.subr.bf16.mxu1 %v571_v0  ;;  %489 = vmatprep.mubr.msk.bf16.mxu1 %vm572_vm0, %v571_v0  ;;  %v34_v3 = vpack.c.bf16 %v606_v2, %v606_v2  ;;  %v530_v4 = vld [vmem:[#allocation2 + $0x20] sm:$0xff]   ;;  %v533_v7 = vld [vmem:[#allocation2 + $0x8] sm:$0xff]   ;;  %v534_v8 = vld [vmem:[#allocation2 + $0x30] sm:$0xff]   ;;  %v98_v19 = vshrl.u32 %v31_v18, 7  ;;  %v32_v52 = vand.u32 127, %v31_v18 }
  0x10   :  { %476 = vmatpush3.bf16.msra.mxu0 %v529_v1  ;;  %482 = vmatpush3.bf16.msra.mxu1 %v530_v4  ;;  %v535_v15 = vld [vmem:[#allocation2 + $0x48] sm:$0xff]   ;;  %v537_v17 = vld [vmem:[#allocation2 + $0x40] sm:$0xff]   ;;  %v538_v28 = vld [vmem:[#allocation2 + $0x38] sm:$0xff]  }
  0x11   :  { %493 = vmatprep.subr.bf16.mxu0 %v571_v0  ;;  %483 = vmatprep.subr.bf16.mxu1 %v571_v0  ;;  %v536_v16 = vld [vmem:[#allocation2 + $0x28] sm:$0xff]   ;;  %v99_v20 = vsub.s32 0, %v98_v19  ;;  %v30_v21 = vld [vmem:[%s643_s2] sm:$0xff]  ;;  %v177_v31 = vsub.s32 1, %v98_v19  ;;  %v315_v33 = vsub.s32 3, %v98_v19  ;;  %v539_v43 = vld [vmem:[#allocation2 + $0x50] sm:$0xff]  }
  0x12   :  { %527 = vset.pattern.permute.xlu1 %v573_v50  ;;  %528 = vset.pattern.permute.xlu0 %v573_v50  ;;  %v241_v51 = vsub.s32 2, %v98_v19  ;;  %vm33_vm4 = vcmp.lt.s32.totalorder %v32_v52, 9  ;;  %v375_v56 = vsub.s32 4, %v98_v19  ;;  %vm427_vm6 = vcmp.eq.s32.totalorder %v32_v52, 9 }
  0x13   :  { %478 = vmatmul.mubr.msk.bf16.vlgmr.msra.gmra.mxu0 %vm43_vm1, %v34_v3  ;;  %v100_v22 = vrot.slane %v30_v21, %v99_v20  ;;  %v178_v32 = vrot.slane %v30_v21, %v177_v31  ;;  %v316_v37 = vrot.slane %v30_v21, %v315_v33 }
  0x14   :  { %497 = vmatprep.mubr.msk.bf16.mxu0 %vm572_vm0, %v571_v0  ;;  %484 = vmatpush3.bf16.msra.mxu1 %v531_v5  ;;  %v242_v53 = vrot.slane %v30_v21, %v241_v51  ;;  %v376_v60 = vrot.slane %v30_v21, %v375_v56 }
  0x15   :  { %485 = vmatprep.subr.bf16.mxu1 %v571_v0  ;;  %494 = vmatpush3.bf16.msra.mxu0 %v534_v8 }
  0x16   :  { %495 = vmatprep.subr.bf16.mxu0 %v571_v0 }
  0x18   :  { %486 = vmatpush3.bf16.msra.mxu1 %v532_v6 }
  0x19   :  { %487 = vmatprep.subr.bf16.mxu1 %v571_v0  ;;  %496 = vmatpush3.bf16.msra.mxu0 %v536_v16 }
  0x1a   :  { %501 = vmatprep.subr.bf16.mxu0 %v571_v0 }
  0x1c   :  { %488 = vmatpush3.bf16.msra.mxu1 %v533_v7 }
  0x1d   :  { %507 = vmatprep.subr.bf16.mxu1 %v571_v0 }
  0xd3   :  { %v81_v9 = vpop.f32.mrf.mxu0 }
  0xd4   :  { %v87_v10 = vmax.f32 %v81_v9, 0.0 }
  0xd5   :  { %v479_v11 = vpop.f32.mrf.mxu0 }
  0xd6   :  { %v88_v12 = vpack.c.bf16 %v87_v10, %v87_v10  ;;  %v292_v10 = vand.u32 2147483647, %v606_v2 }
  0xd7   :  { %v84_v13 = vpop.f32.mrf.mxu0 }
  0xd8   :  { %490 = vmatmul.mubr.msk.bf16.vlgmr.msra.gmra.mxu1 %vm125_vm2, %v88_v12  ;;  %vm293_vm5 = vcmp.ne.f32.partialorder %v292_v10, 1.0 }
  0xd9   :  { %v480_v14 = vpop.f32.mrf.mxu0  ;;  %511 = vmatprep.mubr.msk.bf16.mxu1 %vm572_vm0, %v571_v0  ;;  %508 = vmatpush3.bf16.msra.mxu1 %v535_v15  ;;  %v452_v11 = vsel %vm293_vm5, 1.0, %v571_v0 }
  0xda   :  { %509 = vmatprep.subr.bf16.mxu1 %v571_v0  ;;  %v296_v12 = vsel %vm33_vm4, %v452_v11, 0.0 }
  0xdd   :  { %510 = vmatpush3.bf16.msra.mxu1 %v537_v17 }
 0x198   :  { %v163_v23 = vpop.f32.mrf.mxu1 }
 0x199   :  { %v164_v24 = vadd.f32 %v163_v23, %v100_v22 }
 0x19a   :  { %v491_v25 = vpop.f32.mrf.mxu1 }
 0x19b   :  { %v169_v26 = vmax.f32 %v164_v24, 0.0 }
 0x19c   :  { %v166_v27 = vpop.f32.mrf.mxu1 }
 0x19d   :  { %v170_v29 = vpack.c.bf16 %v169_v26, %v169_v26 }
 0x19e   :  { %v492_v30 = vpop.f32.mrf.mxu1 }
 0x19f   :  { %498 = vmatmul.mubr.msk.bf16.vlgmr.msra.gmra.mxu0 %vm191_vm3, %v170_v29  ;;  %512 = vmatmul.mubr.msk.bf16.vlgmr.msra.gmra.mxu1 %vm191_vm3, %v170_v29 }
 0x1a0   :  { %502 = vmatpush3.bf16.msra.mxu0 %v538_v28  ;;  %503 = vmatprep.mubr.msk.bf16.mxu0 %vm572_vm0, %v571_v0 }
 0x1a1   :  { %515 = vmatprep.subr.bf16.mxu0 %v571_v0 }
 0x25f   :  { %v229_v34 = vpop.f32.mrf.mxu0  ;;  %v363_v35 = vpop.f32.mrf.mxu1 }
 0x260   :  { %v230_v36 = vadd.f32 %v229_v34, %v178_v32  ;;  %v364_v45 = vadd.f32 %v363_v35, %v316_v37 }
 0x261   :  { %v499_v38 = vpop.f32.mrf.mxu0  ;;  %v513_v39 = vpop.f32.mrf.mxu1 }
 0x262   :  { %v235_v40 = vmax.f32 %v230_v36, 0.0  ;;  %v369_v48 = vmax.f32 %v364_v45, 0.0 }
 0x263   :  { %v232_v41 = vpop.f32.mrf.mxu0  ;;  %v366_v42 = vpop.f32.mrf.mxu1 }
 0x264   :  { %v236_v44 = vpack.c.bf16 %v235_v40, %v235_v40  ;;  %v370_v49 = vpack.c.bf16 %v369_v48, %v369_v48 }
 0x265   :  { %v500_v46 = vpop.f32.mrf.mxu0  ;;  %v514_v47 = vpop.f32.mrf.mxu1 }
 0x266   :  { %504 = vmatmul.mubr.msk.bf16.vlgmr.msra.gmra.mxu0 %vm43_vm1, %v236_v44 }
 0x267   :  { %516 = vmatpush3.bf16.msra.mxu0 %v539_v43  ;;  %517 = vmatprep.mubr.msk.bf16.mxu0 %vm572_vm0, %v571_v0 }
 0x26e   :  { %518 = vmatmul.mubr.msk.bf16.vlgmr.msra.gmra.mxu0 %vm43_vm1, %v370_v49 }
 0x326   :  { %v286_v54 = vpop.f32.mrf.mxu0 }
 0x327   :  { %v287_v55 = vadd.f32 %v286_v54, %v242_v53 }
 0x328   :  { %v505_v57 = vpop.f32.mrf.mxu0 }
 0x329   :  { %v297_v58 = vsel %vm33_vm4, %v287_v55, -inf }
 0x32a   :  { %298 = vmax.xlane.f32.xlu0 %v297_v58  ;;  %v289_v59 = vpop.f32.mrf.mxu0 }
 0x32c   :  { %v506_v61 = vpop.f32.mrf.mxu0 }
 0x32e   :  { %v420_v62 = vpop.f32.mrf.mxu0 }
 0x32f   :  { %v421_v63 = vadd.f32 %v420_v62, %v376_v60 }
 0x330   :  { %v519_v1 = vpop.f32.mrf.mxu0 }
 0x331   :  { %540 = vtanh.f32 %v421_v63 }
 0x332   :  { %v423_v3 = vpop.f32.mrf.mxu0 }
 0x334   :  { %v520_v4 = vpop.f32.mrf.mxu0 }
 0x33e   :  { %v541_v5 = vpop.eup %540 }
 0x33f   :  { %430 = vperm.xlu1 %527, %v541_v5  }
 0x3b3   :  { %v299_v6 = vpop.xlane.xlu0 %298 }
 0x3b4   :  { %v300_v7 = vsel %vm33_vm4, %v287_v55, %v299_v6 }
 0x3b5   :  { %v301_v8 = vsub.f32 %v300_v7, %v299_v6 }
 0x3b7   :  { %v302_v9 = vmul.f32 1.442695, %v301_v8 }
 0x3b9   :  { %542 = vpow2.f32 %v302_v9 }
 0x3ba   :  { %v431_v18 = vpop.permute.xlu1 %430 }
 0x3c6   :  { %v543_v13 = vpop.eup %542 }
 0x3c7   :  { %v304_v14 = vmul.f32 %v543_v13, %v296_v12 }
 0x3c9   :  { %305 = vadd.xlane.f32.xlu0 %v304_v14 }
 0x452   :  { %v306_v15 = vpop.xlane.xlu0 %305 }
 0x453   :  { %544 = vrcp.f32 %v306_v15 }
 0x460   :  { %v545_v16 = vpop.eup %544 }
 0x461   :  { %v308_v17 = vmul.f32 %v545_v16, %v304_v14 }
 0x463   :  { %v433_v19 = vsel %vm427_vm6, %v431_v18, %v308_v17 }
 0x464   :  { %434 = vst [vmem:[%s644_s3] sm:$0xff] %v433_v19 }
 0x465   :  { %439 = vsyncpa [#allocation3], 1 }

</bundles_post_ra>
